<compile_context>
chip_gen: v6e
topology: v6e:2x2x1
jax: 0.10.0
libtpu: 0.0.40
codegen_flags: <defaults>
</compile_context>

<pallas_src>
import jax
import jax.numpy as jnp
from jax import lax
from jax.experimental import pallas as pl
from jax.experimental.pallas import tpu as pltpu

D_IN = 1512      # fc1 input features (RegNet-y-3.2GF feature dim)
D_H1 = 256
D_H2 = 64
D_OUT = 2
D_OUT_PAD = 128  # lane-dense padded output width
_SUB_ROWS = 128  # inner MXU M sub-tile (bounds vreg live ranges)

_VMEM_BUDGET = 30 << 20   # double-buffered tile budget; fits every TPU generation
_VMEM_LIMIT = 32 << 20    # explicit scoped-VMEM limit (v5e default is only 16 MiB)


def _round_up(a, m):
    return ((a + m - 1) // m) * m


def _tile_vmem_bytes(tb, x_itemsize):
    """Approximate double-buffered VMEM footprint of one grid step."""
    x_buf = tb * D_IN * x_itemsize
    o_buf = tb * D_OUT_PAD * 2                               # bf16 output tile
    w_buf = ((D_IN * D_H1 + D_H1 * D_H2 + D_H2 * D_OUT_PAD) * 2   # bf16 weights
             + (D_H1 + D_H2 + D_OUT_PAD) * 4)                     # f32 biases
    return 2 * (x_buf + o_buf + w_buf)


def mlp_head_kernel(x_ref, w1_ref, b1_ref, w2_ref, b2_ref, w3_ref, b3_ref, o_ref):
    tb = x_ref.shape[0]
    w1 = w1_ref[...]          # bf16 (1512, 256)
    w2 = w2_ref[...]          # bf16 (256, 64)
    w3 = w3_ref[...]          # bf16 (64, 128)  zero-padded from (64, 2)
    b1 = b1_ref[...]          # f32  (1, 256)
    b2 = b2_ref[...]          # f32  (1, 64)
    b3 = b3_ref[...]          # f32  (1, 128)   zero-padded

    def compute(x_raw):
        # in-kernel cast to bf16 (no wrapper-side materialization of x)
        x_bf = x_raw.astype(jnp.bfloat16)
        # fc1 + ReLU: bf16 MXU, f32 accumulation, f32 bias/activation
        h1 = jnp.dot(x_bf, w1, preferred_element_type=jnp.float32)
        h1 = jnp.maximum(h1 + b1, 0.0)
        # fc2 + ReLU
        h2 = jnp.dot(h1.astype(jnp.bfloat16), w2, preferred_element_type=jnp.float32)
        h2 = jnp.maximum(h2 + b2, 0.0)
        # fc3 (lane-padded: columns 2..127 have zero weights/bias)
        return jnp.dot(h2.astype(jnp.bfloat16), w3,
                       preferred_element_type=jnp.float32) + b3

    if tb <= _SUB_ROWS:
        # small tile: single pass over the whole block
        o_ref[...] = compute(x_ref[...]).astype(o_ref.dtype)
    else:
        # large batch tile: iterate 128-row sub-blocks; bounded unroll keeps
        # code size and vreg pressure manageable at large tb
        n_sub = tb // _SUB_ROWS  # static; tb is a multiple of _SUB_ROWS

        def body(s, carry):
            r0 = pl.multiple_of(s * _SUB_ROWS, _SUB_ROWS)
            x = x_ref[pl.ds(r0, _SUB_ROWS), :]
            o_ref[pl.ds(r0, _SUB_ROWS), :] = compute(x).astype(o_ref.dtype)
            return carry

        lax.fori_loop(0, n_sub, body, 0, unroll=min(n_sub, 4))


def mlp_head_regnet_y_3_2gf(x, kparams, *, batch_tile=1024):
    """x: (B, 1512) float array (f32 or bf16). kparams: output of prepare_params().

    Returns f32 logits of shape (B, 2).
    """
    B, D = x.shape
    assert D == D_IN, f"expected {D_IN} input features, got {D}"

    # --- choose batch tile -------------------------------------------------
    tb = min(batch_tile, _round_up(B, 8))
    if tb > _SUB_ROWS:
        tb = (tb // _SUB_ROWS) * _SUB_ROWS   # multiple of 128 for the sub-loop
    else:
        tb = _round_up(tb, 8)                # multiple of 8 (sublane)
    # respect the double-buffered VMEM budget (safe on all generations)
    while tb > _SUB_ROWS and _tile_vmem_bytes(tb, x.dtype.itemsize) > _VMEM_BUDGET:
        tb -= _SUB_ROWS
    # v7x megacore: the "parallel" grid axis is split across 2 TensorCores, so
    # prefer an even number of grid steps when the batch spans multiple tiles.
    if B > tb:
        while tb > _SUB_ROWS and pl.cdiv(B, tb) % 2 != 0:
            tb -= _SUB_ROWS
    B_pad = _round_up(B, tb)

    # no dtype conversion here (kernel casts per sub-tile); only pad ragged batch
    xin = x
    if B_pad != B:
        xin = jnp.pad(xin, ((0, B_pad - B), (0, 0)))

    w1, b1 = kparams["w1"], kparams["b1"]   # bf16 (1512,256), f32 (1,256)
    w2, b2 = kparams["w2"], kparams["b2"]   # bf16 (256,64),   f32 (1,64)
    w3, b3 = kparams["w3"], kparams["b3"]   # bf16 (64,128),   f32 (1,128)

    full = lambda i: (0, 0)

    out = pl.pallas_call(
        mlp_head_kernel,
        out_shape=jax.ShapeDtypeStruct((B_pad, D_OUT_PAD), jnp.bfloat16),
        grid_spec=pltpu.PrefetchScalarGridSpec(
            num_scalar_prefetch=0,
            grid=(B_pad // tb,),
            in_specs=[
                pl.BlockSpec((tb, D_IN), lambda i: (i, 0)),    # x tile (native dtype)
                pl.BlockSpec((D_IN, D_H1), full),              # w1
                pl.BlockSpec((1, D_H1), full),                 # b1
                pl.BlockSpec((D_H1, D_H2), full),              # w2
                pl.BlockSpec((1, D_H2), full),                 # b2
                pl.BlockSpec((D_H2, D_OUT_PAD), full),         # w3 (padded)
                pl.BlockSpec((1, D_OUT_PAD), full),            # b3 (padded)
            ],
            out_specs=pl.BlockSpec((tb, D_OUT_PAD), lambda i: (i, 0)),
        ),
        compiler_params=pltpu.CompilerParams(
            dimension_semantics=("parallel",),
            vmem_limit_bytes=_VMEM_LIMIT),
    )(xin, w1, b1, w2, b2, w3, b3)

    # strip batch padding and the 126 zero output lanes; upcast bf16 -> f32
    return out[:B, :D_OUT].astype(jnp.float32)


def init_params(key):
    """Deterministic init matching nn.Linear (uniform +/- 1/sqrt(fan_in)), f32."""
    def linear(k, fan_in, fan_out):
        kw, kb = jax.random.split(k)
        bound = 1.0 / jnp.sqrt(fan_in)
        w = jax.random.uniform(kw, (fan_in, fan_out), jnp.float32, -bound, bound)
        b = jax.random.uniform(kb, (1, fan_out), jnp.float32, -bound, bound)
        return w, b

    k1, k2, k3 = jax.random.split(key, 3)
    w1, b1 = linear(k1, D_IN, D_H1)
    w2, b2 = linear(k2, D_H1, D_H2)
    w3, b3 = linear(k3, D_H2, D_OUT)
    return {"w1": w1, "b1": b1, "w2": w2, "b2": b2, "w3": w3, "b3": b3}


def prepare_params(params):
    """Kernel-ready params: bf16 weights, f32 biases, fc3 padded to 128 lanes."""
    w3p = jnp.pad(params["w3"], ((0, 0), (0, D_OUT_PAD - D_OUT)))
    b3p = jnp.pad(params["b3"], ((0, 0), (0, D_OUT_PAD - D_OUT)))
    return {
        "w1": params["w1"].astype(jnp.bfloat16), "b1": params["b1"],
        "w2": params["w2"].astype(jnp.bfloat16), "b2": params["b2"],
        "w3": w3p.astype(jnp.bfloat16),          "b3": b3p,
    }


def mlp_head_ref(x, p):
    """Pure-JAX f32 reference (identical math to the PyTorch module)."""
    h1 = jnp.maximum(x @ p["w1"] + p["b1"], 0.0)
    h2 = jnp.maximum(h1 @ p["w2"] + p["b2"], 0.0)
    return h2 @ p["w3"] + p["b3"]


if __name__ == "__main__":
    key = jax.random.PRNGKey(0)
    k_param, k_x = jax.random.split(key)
    params = init_params(k_param)
    kparams = prepare_params(params)

    B = 8  # small demo batch; feature dim is fixed at 1512 by the module
    x = jax.random.normal(k_x, (B, D_IN), jnp.float32)

    out = mlp_head_regnet_y_3_2gf(x, kparams)
    out = jax.block_until_ready(out)

    ref = mlp_head_ref(x, params)
    assert out.shape == (B, D_OUT)
    max_err = float(jnp.max(jnp.abs(out - ref)))
    rel_err = float(jnp.linalg.norm(out - ref) / (jnp.linalg.norm(ref) + 1e-12))
    # bf16 MXU inputs + bf16 output writeback, f32 accumulation, vs f32 reference
    assert max_err < 1e-1 and rel_err < 4e-2, f"mismatch: max={max_err}, rel={rel_err}"
    print("KERNEL_OK")
</pallas_src>

<mosaic_0001>
module attributes {stable_mosaic.version = 11 : i64} {
  func.func @mlp_head_kernel(%arg0: i32, %arg1: memref<8x1512xf32, #tpu.memory_space<vmem>>, %arg2: memref<1512x256xbf16, #tpu.memory_space<vmem>>, %arg3: memref<1x256xf32, #tpu.memory_space<vmem>>, %arg4: memref<256x64xbf16, #tpu.memory_space<vmem>>, %arg5: memref<1x64xf32, #tpu.memory_space<vmem>>, %arg6: memref<64x128xbf16, #tpu.memory_space<vmem>>, %arg7: memref<1x128xf32, #tpu.memory_space<vmem>>, %arg8: memref<8x128xbf16, #tpu.memory_space<vmem>>) attributes {dimension_semantics = [#tpu.dimension_semantics<parallel>], iteration_bounds = array<i64: 1>, scalar_prefetch = 0 : i64, scratch_operands = 0 : i64, tpu.core_type = #tpu.core_type<tc>, window_params = [{transform_indices = @transform_0, window_bounds = array<i64: 8, 1512>}, {pipeline_mode = #tpu.pipeline_mode<synchronous>, transform_indices = @transform_1, window_bounds = array<i64: 1512, 256>}, {pipeline_mode = #tpu.pipeline_mode<synchronous>, transform_indices = @transform_2, window_bounds = array<i64: 1, 256>}, {pipeline_mode = #tpu.pipeline_mode<synchronous>, transform_indices = @transform_3, window_bounds = array<i64: 256, 64>}, {pipeline_mode = #tpu.pipeline_mode<synchronous>, transform_indices = @transform_4, window_bounds = array<i64: 1, 64>}, {pipeline_mode = #tpu.pipeline_mode<synchronous>, transform_indices = @transform_5, window_bounds = array<i64: 64, 128>}, {pipeline_mode = #tpu.pipeline_mode<synchronous>, transform_indices = @transform_6, window_bounds = array<i64: 1, 128>}, {transform_indices = @transform_7, window_bounds = array<i64: 8, 128>}]} {
    %c0 = arith.constant 0 : index
    %c0_0 = arith.constant 0 : index
    %0 = vector.load %arg2[%c0, %c0_0] : memref<1512x256xbf16, #tpu.memory_space<vmem>>, vector<1512x256xbf16>
    %c0_1 = arith.constant 0 : index
    %c0_2 = arith.constant 0 : index
    %1 = vector.load %arg4[%c0_1, %c0_2] : memref<256x64xbf16, #tpu.memory_space<vmem>>, vector<256x64xbf16>
    %c0_3 = arith.constant 0 : index
    %c0_4 = arith.constant 0 : index
    %2 = vector.load %arg6[%c0_3, %c0_4] : memref<64x128xbf16, #tpu.memory_space<vmem>>, vector<64x128xbf16>
    %c0_5 = arith.constant 0 : index
    %c0_6 = arith.constant 0 : index
    %3 = vector.load %arg3[%c0_5, %c0_6] : memref<1x256xf32, #tpu.memory_space<vmem>>, vector<1x256xf32>
    %c0_7 = arith.constant 0 : index
    %c0_8 = arith.constant 0 : index
    %4 = vector.load %arg5[%c0_7, %c0_8] : memref<1x64xf32, #tpu.memory_space<vmem>>, vector<1x64xf32>
    %c0_9 = arith.constant 0 : index
    %c0_10 = arith.constant 0 : index
    %5 = vector.load %arg7[%c0_9, %c0_10] : memref<1x128xf32, #tpu.memory_space<vmem>>, vector<1x128xf32>
    %c0_11 = arith.constant 0 : index
    %c0_12 = arith.constant 0 : index
    %6 = vector.load %arg1[%c0_11, %c0_12] : memref<8x1512xf32, #tpu.memory_space<vmem>>, vector<8x1512xf32>
    %7 = arith.truncf %6 : vector<8x1512xf32> to vector<8x1512xbf16>
    %cst = arith.constant dense<0.000000e+00> : vector<8x256xf32>
    %8 = tpu.matmul %7, %0, %cst {dimension_numbers = #tpu.dot_dimension_numbers<[1], [0], [0], [1], [0, 0, 1, 1], [], []>} : vector<8x1512xbf16>, vector<1512x256xbf16>, vector<8x256xf32> -> vector<8x256xf32>
    %9 = vector.broadcast %3 : vector<1x256xf32> to vector<8x256xf32>
    %10 = arith.addf %8, %9 : vector<8x256xf32>
    %cst_13 = arith.constant 0.000000e+00 : f32
    %11 = vector.broadcast %cst_13 : f32 to vector<8x256xf32>
    %12 = arith.maximumf %10, %11 : vector<8x256xf32>
    %13 = arith.truncf %12 : vector<8x256xf32> to vector<8x256xbf16>
    %cst_14 = arith.constant dense<0.000000e+00> : vector<8x64xf32>
    %14 = tpu.matmul %13, %1, %cst_14 {dimension_numbers = #tpu.dot_dimension_numbers<[1], [0], [0], [1], [0, 0, 1, 1], [], []>} : vector<8x256xbf16>, vector<256x64xbf16>, vector<8x64xf32> -> vector<8x64xf32>
    %15 = vector.broadcast %4 : vector<1x64xf32> to vector<8x64xf32>
    %16 = arith.addf %14, %15 : vector<8x64xf32>
    %cst_15 = arith.constant 0.000000e+00 : f32
    %17 = vector.broadcast %cst_15 : f32 to vector<8x64xf32>
    %18 = arith.maximumf %16, %17 : vector<8x64xf32>
    %19 = arith.truncf %18 : vector<8x64xf32> to vector<8x64xbf16>
    %cst_16 = arith.constant dense<0.000000e+00> : vector<8x128xf32>
    %20 = tpu.matmul %19, %2, %cst_16 {dimension_numbers = #tpu.dot_dimension_numbers<[1], [0], [0], [1], [0, 0, 1, 1], [], []>} : vector<8x64xbf16>, vector<64x128xbf16>, vector<8x128xf32> -> vector<8x128xf32>
    %21 = vector.broadcast %5 : vector<1x128xf32> to vector<8x128xf32>
    %22 = arith.addf %20, %21 : vector<8x128xf32>
    %23 = arith.truncf %22 : vector<8x128xf32> to vector<8x128xbf16>
    %c0_17 = arith.constant 0 : index
    %c0_18 = arith.constant 0 : index
    %24 = vector.load %arg8[%c0_17, %c0_18] : memref<8x128xbf16, #tpu.memory_space<vmem>>, vector<8x128xbf16>
    tpu.vector_store %arg8[%c0_17, %c0_18], %23 {strides = array<i32>} : memref<8x128xbf16, #tpu.memory_space<vmem>>, vector<8x128xbf16>,
    return
  }
  func.func @transform_0(%arg0: i32) -> (i32, i32) {
    %c0_i32 = arith.constant 0 : i32
    %c0_i32_0 = arith.constant 0 : i32
    return %arg0, %c0_i32 : i32, i32
  }
  func.func @transform_1(%arg0: i32) -> (i32, i32) {
    %c0_i32 = arith.constant 0 : i32
    %c0_i32_0 = arith.constant 0 : i32
    %c0_i32_1 = arith.constant 0 : i32
    return %c0_i32, %c0_i32_0 : i32, i32
  }
  func.func @transform_2(%arg0: i32) -> (i32, i32) {
    %c0_i32 = arith.constant 0 : i32
    %c0_i32_0 = arith.constant 0 : i32
    %c0_i32_1 = arith.constant 0 : i32
    return %c0_i32, %c0_i32_0 : i32, i32
  }
  func.func @transform_3(%arg0: i32) -> (i32, i32) {
    %c0_i32 = arith.constant 0 : i32
    %c0_i32_0 = arith.constant 0 : i32
    %c0_i32_1 = arith.constant 0 : i32
    return %c0_i32, %c0_i32_0 : i32, i32
  }
  func.func @transform_4(%arg0: i32) -> (i32, i32) {
    %c0_i32 = arith.constant 0 : i32
    %c0_i32_0 = arith.constant 0 : i32
    %c0_i32_1 = arith.constant 0 : i32
    return %c0_i32, %c0_i32_0 : i32, i32
  }
  func.func @transform_5(%arg0: i32) -> (i32, i32) {
    %c0_i32 = arith.constant 0 : i32
    %c0_i32_0 = arith.constant 0 : i32
    %c0_i32_1 = arith.constant 0 : i32
    return %c0_i32, %c0_i32_0 : i32, i32
  }
  func.func @transform_6(%arg0: i32) -> (i32, i32) {
    %c0_i32 = arith.constant 0 : i32
    %c0_i32_0 = arith.constant 0 : i32
    %c0_i32_1 = arith.constant 0 : i32
    return %c0_i32, %c0_i32_0 : i32, i32
  }
  func.func @transform_7(%arg0: i32) -> (i32, i32) {
    %c0_i32 = arith.constant 0 : i32
    %c0_i32_0 = arith.constant 0 : i32
    return %arg0, %c0_i32 : i32, i32
  }
}

</mosaic_0001>

<bundles_post_ra>
// kernel: tpu_custom_call.1
= control target key start
LH: loop header
LB: loop body
LE: loop exit
PB: predicated region body
PF: predicated region fallthrough
CT: control target
= control target key end

     0   :  { %12 = vsyncpa [#allocation3], 0  ;;  %s2516_s0 = inlined_call_operand.vmem [shape: f32[8,1512], index: 0, kind: input, shape index: {}]   ;;  %s2517_s1 = inlined_call_operand.hbm [shape: bf16[1512,256], index: 1, kind: input, shape index: {}]   ;;  %s2518_s2 = inlined_call_operand.vmem [shape: f32[1,256], index: 2, kind: input, shape index: {}]   ;;  %s2519_s3 = inlined_call_operand.vmem [shape: bf16[256,64], index: 3, kind: input, shape index: {}]   ;;  %s2520_s4 = inlined_call_operand.vmem [shape: f32[1,64], index: 4, kind: input, shape index: {}]   ;;  %s2521_s5 = inlined_call_operand.vmem [shape: bf16[64,128], index: 5, kind: input, shape index: {}]   ;;  %s2522_s6 = inlined_call_operand.vmem [shape: f32[1,128], index: 6, kind: input, shape index: {}]   ;;  %s2523_s7 = inlined_call_operand.hbm [shape: bf16[8,128], index: 7, kind: output, shape index: {}]  }
   0x1   :  { %13 = vsyncpa [#allocation4], 0  ;;  %s2358_s24 = smov [#allocation2]  }
   0x2   :  { %s21_s25 = sshll.u32 %s2358_s24, 4  ;;  %s22_s25 = int_to_ptr.vmem [resolvable:$true] %s21_s25 }
   0x3   :  { %s2322_s26 = scalar_lea.vmem %s22_s25, 24192  ;;  %p2327_p1 = scmp.lt.s32.totalorder %s22_s25, %s22_s25 }
   0x4   :  { %p2323_p0 = scmp.ne.s32.totalorder %s22_s25, %s2322_s26  ;;  %p2328_p2 = scmp.lt.s32.totalorder %s2322_s26, %s2322_s26 }
   0x6   :  { %p2329_p3 = por %p2328_p2, %p2327_p1 }
   0x8   :  { %p2330_p4 = pnand %p2329_p3, %p2323_p0 }
   0xa   :  { %2333 = shalt.err (!%p2330_p4)
}
   0xb   :  { %s2359_s27 = smov 128   ;;  %s2360_s28 = smov 8  }
   0xc   :  { %27 = dma.hbm_to_vmem [thread:$0]  %s2517_s1, 24192, %s22_s25, [#allocation3], %s2359_s27, %s2359_s27, %s2360_s28  }
   0xd   :  { %2354 = dma.done.wait [#allocation3], 24192  }
   0xe   :  { %2355 = vsyncadd [#allocation3], 4294943104  ;;  %v2010_v0 = vld [vmem:[#allocation2 + $0x74] ss:$8 sps:$4 sm:$0xff]   ;;  %v2014_v2 = vld [vmem:[#allocation2 + $0x70] ss:$8 sps:$4 sm:$0xff]  }
   0xf   :  { %v2012_v1 = vld [vmem:[#allocation2 + $0x174] ss:$8 sps:$4 sm:$0xff]   ;;  %1265 = vmatprep.subr.bf16.mxu0 %v2010_v0  ;;  %v2015_v3 = vld [vmem:[#allocation2 + $0x170] ss:$8 sps:$4 sm:$0xff]   ;;  %v2016_v4 = vld [vmem:[#allocation2 + $0x64] ss:$8 sps:$4 sm:$0xff]  }
  0x10   :  { %1306 = vmatprep.subr.bf16.mxu1 %v2012_v1  ;;  %1266 = vmatpush1.bf16.msra.mxu0 %v2014_v2  ;;  %v2018_v5 = vld [vmem:[#allocation2 + $0x164] ss:$8 sps:$4 sm:$0xff]   ;;  %v2020_v6 = vld [vmem:[#allocation2 + $0x60] ss:$8 sps:$4 sm:$0xff]   ;;  %v2022_v8 = vld [vmem:[#allocation2 + $0x54] ss:$8 sps:$4 sm:$0xff]  }
  0x11   :  { %1307 = vmatpush1.bf16.msra.mxu1 %v2015_v3  ;;  %1267 = vmatprep.subr.bf16.mxu0 %v2016_v4  ;;  %v2021_v7 = vld [vmem:[#allocation2 + $0x160] ss:$8 sps:$4 sm:$0xff]   ;;  %v2024_v9 = vld [vmem:[#allocation2 + $0x154] ss:$8 sps:$4 sm:$0xff]   ;;  %v2026_v10 = vld [vmem:[#allocation2 + $0x50] ss:$8 sps:$4 sm:$0xff]  }
  0x12   :  { %1308 = vmatprep.subr.bf16.mxu1 %v2018_v5  ;;  %v2027_v11 = vld [vmem:[#allocation2 + $0x150] ss:$8 sps:$4 sm:$0xff]   ;;  %v2028_v12 = vld [vmem:[#allocation2 + $0x44] ss:$8 sps:$4 sm:$0xff]   ;;  %v2032_v14 = vld [vmem:[#allocation2 + $0x40] ss:$8 sps:$4 sm:$0xff]  }
  0x13   :  { %v2030_v13 = vld [vmem:[#allocation2 + $0x144] ss:$8 sps:$4 sm:$0xff]   ;;  %v2033_v15 = vld [vmem:[#allocation2 + $0x140] ss:$8 sps:$4 sm:$0xff]   ;;  %v2034_v16 = vld [vmem:[#allocation2 + $0x34] ss:$8 sps:$4 sm:$0xff]  }
  0x14   :  { %1268 = vmatpush1.bf16.msra.mxu0 %v2020_v6  ;;  %v2036_v17 = vld [vmem:[#allocation2 + $0x134] ss:$8 sps:$4 sm:$0xff]   ;;  %v2038_v18 = vld [vmem:[#allocation2 + $0x30] ss:$8 sps:$4 sm:$0xff]   ;;  %v2040_v20 = vld [vmem:[#allocation2 + $0x24] ss:$8 sps:$4 sm:$0xff]  }
  0x15   :  { %1309 = vmatpush1.bf16.msra.mxu1 %v2021_v7  ;;  %1269 = vmatprep.subr.bf16.mxu0 %v2022_v8  ;;  %v2039_v19 = vld [vmem:[#allocation2 + $0x130] ss:$8 sps:$4 sm:$0xff]   ;;  %v2042_v21 = vld [vmem:[#allocation2 + $0x124] ss:$8 sps:$4 sm:$0xff]   ;;  %v2044_v22 = vld [vmem:[#allocation2 + $0x20] ss:$8 sps:$4 sm:$0xff]  }
  0x16   :  { %1310 = vmatprep.subr.bf16.mxu1 %v2024_v9  ;;  %v2045_v23 = vld [vmem:[#allocation2 + $0x120] ss:$8 sps:$4 sm:$0xff]   ;;  %v2046_v24 = vld [vmem:[#allocation2 + $0x14] ss:$8 sps:$4 sm:$0xff]   ;;  %v2050_v26 = vld [vmem:[#allocation2 + $0x10] ss:$8 sps:$4 sm:$0xff]  }
  0x17   :  { %v2048_v25 = vld [vmem:[#allocation2 + $0x114] ss:$8 sps:$4 sm:$0xff]   ;;  %v2051_v27 = vld [vmem:[#allocation2 + $0x110] ss:$8 sps:$4 sm:$0xff]   ;;  %v2052_v28 = vld [vmem:[#allocation2 + $0x4] ss:$8 sps:$4 sm:$0xff]  }
  0x18   :  { %1270 = vmatpush1.bf16.msra.mxu0 %v2026_v10  ;;  %v2054_v29 = vld [vmem:[#allocation2 + $0x104] ss:$8 sps:$4 sm:$0xff]   ;;  %v2056_v30 = vld [vmem:[#allocation2] ss:$8 sps:$4 sm:$0xff]   ;;  %v2058_v32 = vld [vmem:[#allocation2 + $0xf4] ss:$8 sps:$4 sm:$0xff]  }
  0x19   :  { %1311 = vmatpush1.bf16.msra.mxu1 %v2027_v11  ;;  %1271 = vmatprep.subr.bf16.mxu0 %v2028_v12  ;;  %v2057_v31 = vld [vmem:[#allocation2 + $0x100] ss:$8 sps:$4 sm:$0xff]   ;;  %v2060_v33 = vld [vmem:[#allocation2 + $0x1f4] ss:$8 sps:$4 sm:$0xff]   ;;  %v2062_v34 = vld [vmem:[#allocation2 + $0xf0] ss:$8 sps:$4 sm:$0xff]  }
  0x1a   :  { %1312 = vmatprep.subr.bf16.mxu1 %v2030_v13  ;;  %v2063_v35 = vld [vmem:[#allocation2 + $0x1f0] ss:$8 sps:$4 sm:$0xff]   ;;  %v2064_v36 = vld [vmem:[#allocation2 + $0xe4] ss:$8 sps:$4 sm:$0xff]   ;;  %v2068_v38 = vld [vmem:[#allocation2 + $0xe0] ss:$8 sps:$4 sm:$0xff]  }
  0x1b   :  { %v2066_v37 = vld [vmem:[#allocation2 + $0x1e4] ss:$8 sps:$4 sm:$0xff]   ;;  %v2069_v39 = vld [vmem:[#allocation2 + $0x1e0] ss:$8 sps:$4 sm:$0xff]   ;;  %v2070_v40 = vld [vmem:[#allocation2 + $0xd4] ss:$8 sps:$4 sm:$0xff]  }
  0x1c   :  { %1272 = vmatpush1.bf16.msra.mxu0 %v2032_v14  ;;  %v2072_v41 = vld [vmem:[#allocation2 + $0x1d4] ss:$8 sps:$4 sm:$0xff]   ;;  %v2074_v42 = vld [vmem:[#allocation2 + $0xd0] ss:$8 sps:$4 sm:$0xff]   ;;  %v2076_v44 = vld [vmem:[#allocation2 + $0xc4] ss:$8 sps:$4 sm:$0xff]  }
  0x1d   :  { %1313 = vmatpush1.bf16.msra.mxu1 %v2033_v15  ;;  %1273 = vmatprep.subr.bf16.mxu0 %v2034_v16  ;;  %v2075_v43 = vld [vmem:[#allocation2 + $0x1d0] ss:$8 sps:$4 sm:$0xff]   ;;  %v2078_v45 = vld [vmem:[#allocation2 + $0x1c4] ss:$8 sps:$4 sm:$0xff]   ;;  %v2080_v47 = vld [vmem:[#allocation2 + $0xc0] ss:$8 sps:$4 sm:$0xff]  }
  0x1e   :  { %1314 = vmatprep.subr.bf16.mxu1 %v2036_v17  ;;  %v275_v46 = vld [vmem:[%s2516_s0 + $0x8] sm:$0xff]  ;;  %v277_v49 = vld [vmem:[%s2516_s0 + $0x18] sm:$0xff]  ;;  %v274_v4 = vld [vmem:[%s2516_s0] sm:$0xff]  ;;  %vm1254_vm0 = vcmask 850944   ;;  %vm1258_vm1 = vcmask 1043456   ;;  %vm2362_vm2 = vmmov 0  }
  0x1f   :  { %v287_v48 = vpack.c.bf16 %v275_v46, %v275_v46  ;;  %v2081_v50 = vld [vmem:[#allocation2 + $0x1c0] ss:$8 sps:$4 sm:$0xff]   ;;  %v2082_v51 = vld [vmem:[#allocation2 + $0xb4] ss:$8 sps:$4 sm:$0xff]   ;;  %v289_v52 = vpack.c.bf16 %v277_v49, %v277_v49  ;;  %v2086_v54 = vld [vmem:[#allocation2 + $0xb0] ss:$8 sps:$4 sm:$0xff]   ;;  %v286_v8 = vpack.c.bf16 %v274_v4, %v274_v4 }
  0x20   :  { %1274 = vmatpush1.bf16.msra.mxu0 %v2038_v18  ;;  %v2084_v53 = vld [vmem:[#allocation2 + $0x1b4] ss:$8 sps:$4 sm:$0xff]   ;;  %v2087_v55 = vld [vmem:[#allocation2 + $0x1b0] ss:$8 sps:$4 sm:$0xff]   ;;  %v2088_v56 = vld [vmem:[#allocation2 + $0xa4] ss:$8 sps:$4 sm:$0xff]  }
  0x21   :  { %1315 = vmatpush1.bf16.msra.mxu1 %v2039_v19  ;;  %1275 = vmatprep.subr.bf16.mxu0 %v2040_v20  ;;  %v2090_v57 = vld [vmem:[#allocation2 + $0x1a4] ss:$8 sps:$4 sm:$0xff]   ;;  %v2092_v58 = vld [vmem:[#allocation2 + $0xa0] ss:$8 sps:$4 sm:$0xff]   ;;  %v2094_v60 = vld [vmem:[#allocation2 + $0x94] ss:$8 sps:$4 sm:$0xff]  }
  0x22   :  { %1316 = vmatprep.subr.bf16.mxu1 %v2042_v21  ;;  %1297 = vmatprep.mubr.bf16.mxu0 %v287_v48  ;;  %v2093_v59 = vld [vmem:[#allocation2 + $0x1a0] ss:$8 sps:$4 sm:$0xff]   ;;  %v2096_v61 = vld [vmem:[#allocation2 + $0x194] ss:$8 sps:$4 sm:$0xff]   ;;  %v2098_v62 = vld [vmem:[#allocation2 + $0x90] ss:$8 sps:$4 sm:$0xff]  }
  0x23   :  { %1338 = vmatprep.mubr.bf16.mxu1 %v289_v52  ;;  %v2099_v63 = vld [vmem:[#allocation2 + $0x190] ss:$8 sps:$4 sm:$0xff]   ;;  %v2100_v0 = vld [vmem:[#allocation2 + $0x84] ss:$8 sps:$4 sm:$0xff]   ;;  %v2104_v2 = vld [vmem:[#allocation2 + $0x80] ss:$8 sps:$4 sm:$0xff]  }
  0x24   :  { %1276 = vmatpush1.bf16.msra.mxu0 %v2044_v22  ;;  %v2102_v1 = vld [vmem:[#allocation2 + $0x184] ss:$8 sps:$4 sm:$0xff]   ;;  %v2105_v3 = vld [vmem:[#allocation2 + $0x180] ss:$8 sps:$4 sm:$0xff]   ;;  %v2108_v5 = vld [vmem:[#allocation2 + $0x274] ss:$8 sps:$4 sm:$0xff]  }
  0x25   :  { %1317 = vmatpush1.bf16.msra.mxu1 %v2045_v23  ;;  %1277 = vmatprep.subr.bf16.mxu0 %v2046_v24  ;;  %v276_v6 = vld [vmem:[%s2516_s0 + $0x10] sm:$0xff]  ;;  %v2114_v12 = vld [vmem:[#allocation2 + $0x264] ss:$8 sps:$4 sm:$0xff]   ;;  %v2112_v14 = vld [vmem:[#allocation2 + $0x260] ss:$8 sps:$4 sm:$0xff]   ;;  %vm1689_vm3 = vcmask 523264  }
  0x26   :  { %1318 = vmatprep.subr.bf16.mxu1 %v2048_v25  ;;  %v2111_v7 = vld [vmem:[#allocation2 + $0x374] ss:$8 sps:$4 sm:$0xff]   ;;  %v2106_v9 = vld [vmem:[#allocation2 + $0x270] ss:$8 sps:$4 sm:$0xff]   ;;  %v288_v11 = vpack.c.bf16 %v276_v6, %v276_v6  ;;  %v2117_v13 = vld [vmem:[#allocation2 + $0x364] ss:$8 sps:$4 sm:$0xff]  }
  0x27   :  { %v2109_v10 = vld [vmem:[#allocation2 + $0x370] ss:$8 sps:$4 sm:$0xff]   ;;  %v2115_v15 = vld [vmem:[#allocation2 + $0x360] ss:$8 sps:$4 sm:$0xff]   ;;  %v2120_v16 = vld [vmem:[#allocation2 + $0x254] ss:$8 sps:$4 sm:$0xff]  }
  0x28   :  { %1278 = vmatpush1.bf16.msra.mxu0 %v2050_v26  ;;  %v2123_v17 = vld [vmem:[#allocation2 + $0x354] ss:$8 sps:$4 sm:$0xff]   ;;  %v2118_v18 = vld [vmem:[#allocation2 + $0x250] ss:$8 sps:$4 sm:$0xff]   ;;  %v2126_v20 = vld [vmem:[#allocation2 + $0x244] ss:$8 sps:$4 sm:$0xff]  }
  0x29   :  { %1319 = vmatpush1.bf16.msra.mxu1 %v2051_v27  ;;  %1279 = vmatprep.subr.bf16.mxu0 %v2052_v28  ;;  %v2121_v19 = vld [vmem:[#allocation2 + $0x350] ss:$8 sps:$4 sm:$0xff]   ;;  %v2129_v21 = vld [vmem:[#allocation2 + $0x344] ss:$8 sps:$4 sm:$0xff]   ;;  %v2124_v22 = vld [vmem:[#allocation2 + $0x240] ss:$8 sps:$4 sm:$0xff]  }
  0x2a   :  { %1320 = vmatprep.subr.bf16.mxu1 %v2054_v29  ;;  %v2127_v23 = vld [vmem:[#allocation2 + $0x340] ss:$8 sps:$4 sm:$0xff]   ;;  %v2132_v24 = vld [vmem:[#allocation2 + $0x234] ss:$8 sps:$4 sm:$0xff]   ;;  %v2130_v26 = vld [vmem:[#allocation2 + $0x230] ss:$8 sps:$4 sm:$0xff]  }
  0x2b   :  { %v2135_v25 = vld [vmem:[#allocation2 + $0x334] ss:$8 sps:$4 sm:$0xff]   ;;  %v2133_v27 = vld [vmem:[#allocation2 + $0x330] ss:$8 sps:$4 sm:$0xff]   ;;  %v2138_v28 = vld [vmem:[#allocation2 + $0x224] ss:$8 sps:$4 sm:$0xff]  }
  0x2c   :  { %1280 = vmatpush1.bf16.msra.mxu0 %v2056_v30  ;;  %v2141_v29 = vld [vmem:[#allocation2 + $0x324] ss:$8 sps:$4 sm:$0xff]   ;;  %v2136_v30 = vld [vmem:[#allocation2 + $0x220] ss:$8 sps:$4 sm:$0xff]   ;;  %v2154_v46 = vld [vmem:[#allocation2 + $0x2f0] ss:$8 sps:$4 sm:$0xff]  }
  0x2d   :  { %1321 = vmatpush1.bf16.msra.mxu1 %v2057_v31  ;;  %1281 = vmatprep.subr.bf16.mxu0 %v2058_v32  ;;  %v2139_v31 = vld [vmem:[#allocation2 + $0x320] ss:$8 sps:$4 sm:$0xff]   ;;  %v2144_v32 = vld [vmem:[#allocation2 + $0x214] ss:$8 sps:$4 sm:$0xff]   ;;  %v2162_v48 = vld [vmem:[#allocation2 + $0x2e4] ss:$8 sps:$4 sm:$0xff]  }
  0x2e   :  { %1322 = vmatprep.subr.bf16.mxu1 %v2060_v33  ;;  %v2147_v33 = vld [vmem:[#allocation2 + $0x314] ss:$8 sps:$4 sm:$0xff]   ;;  %v2165_v49 = vld [vmem:[#allocation2 + $0x3e4] ss:$8 sps:$4 sm:$0xff]   ;;  %v2190_v6 = vld [vmem:[#allocation2 + $0x290] ss:$8 sps:$4 sm:$0xff]  }
  0x2f   :  { %v2168_v52 = vld [vmem:[#allocation2 + $0x2d4] ss:$8 sps:$4 sm:$0xff]  }
  0x30   :  { %1282 = vmatpush2.bf16.msra.mxu0 %v2062_v34  ;;  %v279_v34 = vld [vmem:[%s2516_s0 + $0x28] sm:$0xff]  ;;  %v2192_v4 = vld [vmem:[#allocation2 + $0x294] ss:$8 sps:$4 sm:$0xff]  }
  0x31   :  { %1323 = vmatpush2.bf16.msra.mxu1 %v2063_v35  ;;  %1283 = vmatprep.subr.bf16.mxu0 %v2064_v36  ;;  %v2142_v35 = vld [vmem:[#allocation2 + $0x210] ss:$8 sps:$4 sm:$0xff]   ;;  %v291_v36 = vpack.c.bf16 %v279_v34, %v279_v34  ;;  %v2220_v34 = vld [vmem:[#allocation2 + $0x440] ss:$8 sps:$4 sm:$0xff]  }
  0x32   :  { %1324 = vmatprep.subr.bf16.mxu1 %v2066_v37  ;;  %v281_v37 = vld [vmem:[%s2516_s0 + $0x38] sm:$0xff] }
  0x34   :  { %1284 = vmatpush2.bf16.msra.mxu0 %v2068_v38  ;;  %v2145_v38 = vld [vmem:[#allocation2 + $0x310] ss:$8 sps:$4 sm:$0xff]  }
  0x35   :  { %1325 = vmatpush2.bf16.msra.mxu1 %v2069_v39  ;;  %1285 = vmatprep.subr.bf16.mxu0 %v2070_v40  ;;  %v2150_v39 = vld [vmem:[#allocation2 + $0x204] ss:$8 sps:$4 sm:$0xff]   ;;  %v293_v40 = vpack.c.bf16 %v281_v37, %v281_v37  ;;  %v2231_v37 = vld [vmem:[#allocation2 + $0x534] ss:$8 sps:$4 sm:$0xff]  }
  0x36   :  { %1326 = vmatprep.subr.bf16.mxu1 %v2072_v41  ;;  %v2153_v41 = vld [vmem:[#allocation2 + $0x304] ss:$8 sps:$4 sm:$0xff]  }
  0x38   :  { %1286 = vmatpush2.bf16.msra.mxu0 %v2074_v42  ;;  %v2148_v42 = vld [vmem:[#allocation2 + $0x200] ss:$8 sps:$4 sm:$0xff]  }
  0x39   :  { %1327 = vmatpush2.bf16.msra.mxu1 %v2075_v43  ;;  %1287 = vmatprep.subr.bf16.mxu0 %v2076_v44  ;;  %v2151_v43 = vld [vmem:[#allocation2 + $0x300] ss:$8 sps:$4 sm:$0xff]   ;;  %v2156_v44 = vld [vmem:[#allocation2 + $0x2f4] ss:$8 sps:$4 sm:$0xff]  }
  0x3a   :  { %1328 = vmatprep.subr.bf16.mxu1 %v2078_v45  ;;  %v2159_v45 = vld [vmem:[#allocation2 + $0x3f4] ss:$8 sps:$4 sm:$0xff]  }
  0x3c   :  { %1288 = vmatpush2.bf16.msra.mxu0 %v2080_v47  ;;  %v2157_v47 = vld [vmem:[#allocation2 + $0x3f0] ss:$8 sps:$4 sm:$0xff]  }
  0x3d   :  { %1329 = vmatpush2.bf16.msra.mxu1 %v2081_v50  ;;  %1289 = vmatprep.subr.bf16.mxu0 %v2082_v51  ;;  %v2160_v50 = vld [vmem:[#allocation2 + $0x2e0] ss:$8 sps:$4 sm:$0xff]  }
  0x3e   :  { %1330 = vmatprep.subr.bf16.mxu1 %v2084_v53  ;;  %v2163_v51 = vld [vmem:[#allocation2 + $0x3e0] ss:$8 sps:$4 sm:$0xff]   ;;  %v2171_v53 = vld [vmem:[#allocation2 + $0x3d4] ss:$8 sps:$4 sm:$0xff]  }
  0x40   :  { %1290 = vmatpush2.bf16.msra.mxu0 %v2086_v54  ;;  %v2166_v54 = vld [vmem:[#allocation2 + $0x2d0] ss:$8 sps:$4 sm:$0xff]  }
  0x41   :  { %1331 = vmatpush2.bf16.msra.mxu1 %v2087_v55  ;;  %1291 = vmatprep.subr.bf16.mxu0 %v2088_v56  ;;  %v2169_v55 = vld [vmem:[#allocation2 + $0x3d0] ss:$8 sps:$4 sm:$0xff]   ;;  %v2174_v56 = vld [vmem:[#allocation2 + $0x2c4] ss:$8 sps:$4 sm:$0xff]  }
  0x42   :  { %1332 = vmatprep.subr.bf16.mxu1 %v2090_v57  ;;  %v2177_v57 = vld [vmem:[#allocation2 + $0x3c4] ss:$8 sps:$4 sm:$0xff]  }
  0x44   :  { %1292 = vmatpush2.bf16.msra.mxu0 %v2092_v58  ;;  %v2172_v58 = vld [vmem:[#allocation2 + $0x2c0] ss:$8 sps:$4 sm:$0xff]  }
  0x45   :  { %1333 = vmatpush2.bf16.msra.mxu1 %v2093_v59  ;;  %1293 = vmatprep.subr.bf16.mxu0 %v2094_v60  ;;  %v2175_v59 = vld [vmem:[#allocation2 + $0x3c0] ss:$8 sps:$4 sm:$0xff]   ;;  %v2180_v60 = vld [vmem:[#allocation2 + $0x2b4] ss:$8 sps:$4 sm:$0xff]  }
  0x46   :  { %1334 = vmatprep.subr.bf16.mxu1 %v2096_v61  ;;  %v2183_v61 = vld [vmem:[#allocation2 + $0x3b4] ss:$8 sps:$4 sm:$0xff]  }
  0x48   :  { %1294 = vmatpush2.bf16.msra.mxu0 %v2098_v62  ;;  %v2178_v62 = vld [vmem:[#allocation2 + $0x2b0] ss:$8 sps:$4 sm:$0xff]  }
  0x49   :  { %1335 = vmatpush2.bf16.msra.mxu1 %v2099_v63  ;;  %1295 = vmatprep.subr.bf16.mxu0 %v2100_v0  ;;  %v2181_v63 = vld [vmem:[#allocation2 + $0x3b0] ss:$8 sps:$4 sm:$0xff]   ;;  %v2186_v0 = vld [vmem:[#allocation2 + $0x2a4] ss:$8 sps:$4 sm:$0xff]  }
  0x4a   :  { %1336 = vmatprep.subr.bf16.mxu1 %v2102_v1  ;;  %v2189_v1 = vld [vmem:[#allocation2 + $0x3a4] ss:$8 sps:$4 sm:$0xff]  }
  0x4c   :  { %1296 = vmatpush2.bf16.msra.mxu0 %v2104_v2  ;;  %v2184_v2 = vld [vmem:[#allocation2 + $0x2a0] ss:$8 sps:$4 sm:$0xff]  }
  0x4d   :  { %1337 = vmatpush2.bf16.msra.mxu1 %v2105_v3  ;;  %1347 = vmatprep.subr.bf16.mxu0 %v2108_v5  ;;  %v2187_v3 = vld [vmem:[#allocation2 + $0x3a0] ss:$8 sps:$4 sm:$0xff]   ;;  %v2195_v5 = vld [vmem:[#allocation2 + $0x394] ss:$8 sps:$4 sm:$0xff]  }
  0x4e   :  { %1388 = vmatprep.subr.bf16.mxu1 %v2111_v7  ;;  %v2193_v7 = vld [vmem:[#allocation2 + $0x390] ss:$8 sps:$4 sm:$0xff]  }
  0x4f   :  { %1298 = vmatmul.mubr.bf16.vlgmr.msra.gmra.mxu0 %v286_v8  ;;  %v2198_v8 = vld [vmem:[#allocation2 + $0x284] ss:$8 sps:$4 sm:$0xff]  }
  0x50   :  { %1339 = vmatmul.mubr.bf16.vlgmr.msra.gmra.mxu1 %v288_v11  ;;  %1348 = vmatpush1.bf16.msra.mxu0 %v2106_v9  ;;  %v2201_v9 = vld [vmem:[#allocation2 + $0x384] ss:$8 sps:$4 sm:$0xff]   ;;  %v2199_v11 = vld [vmem:[#allocation2 + $0x380] ss:$8 sps:$4 sm:$0xff]  }
  0x51   :  { %1389 = vmatpush1.bf16.msra.mxu1 %v2109_v10  ;;  %1349 = vmatprep.subr.bf16.mxu0 %v2114_v12  ;;  %v2196_v10 = vld [vmem:[#allocation2 + $0x280] ss:$8 sps:$4 sm:$0xff]  }
  0x52   :  { %1390 = vmatprep.subr.bf16.mxu1 %v2117_v13  ;;  %1379 = vmatprep.mubr.bf16.mxu0 %v291_v36  ;;  %v278_v12 = vld [vmem:[%s2516_s0 + $0x20] sm:$0xff]  ;;  %v280_v13 = vld [vmem:[%s2516_s0 + $0x30] sm:$0xff] }
  0x53   :  { %1420 = vmatprep.mubr.bf16.mxu1 %v293_v40  ;;  %v2228_v36 = vld [vmem:[#allocation2 + $0x434] ss:$8 sps:$4 sm:$0xff]   ;;  %v2234_v40 = vld [vmem:[#allocation2 + $0x424] ss:$8 sps:$4 sm:$0xff]  }
  0x54   :  { %1350 = vmatpush1.bf16.msra.mxu0 %v2112_v14  ;;  %v2204_v14 = vld [vmem:[#allocation2 + $0x474] ss:$8 sps:$4 sm:$0xff]  }
  0x55   :  { %1391 = vmatpush1.bf16.msra.mxu1 %v2115_v15  ;;  %1351 = vmatprep.subr.bf16.mxu0 %v2120_v16  ;;  %v2207_v15 = vld [vmem:[#allocation2 + $0x574] ss:$8 sps:$4 sm:$0xff]   ;;  %v290_v16 = vpack.c.bf16 %v278_v12, %v278_v12  ;;  %v2279_v12 = vld [vmem:[#allocation2 + $0x4a0] ss:$8 sps:$4 sm:$0xff]  }
  0x56   :  { %1392 = vmatprep.subr.bf16.mxu1 %v2123_v17  ;;  %v292_v17 = vpack.c.bf16 %v280_v13, %v280_v13  ;;  %v2282_v13 = vld [vmem:[#allocation2 + $0x590] ss:$8 sps:$4 sm:$0xff]  }
  0x58   :  { %1352 = vmatpush1.bf16.msra.mxu0 %v2118_v18  ;;  %v285_v18 = vld [vmem:[%s2516_s0 + $0x58] sm:$0xff] }
  0x59   :  { %1393 = vmatpush1.bf16.msra.mxu1 %v2121_v19  ;;  %1353 = vmatprep.subr.bf16.mxu0 %v2126_v20  ;;  %v2202_v19 = vld [vmem:[#allocation2 + $0x470] ss:$8 sps:$4 sm:$0xff]  }
  0x5a   :  { %1394 = vmatprep.subr.bf16.mxu1 %v2129_v21  ;;  %v2205_v20 = vld [vmem:[#allocation2 + $0x570] ss:$8 sps:$4 sm:$0xff]   ;;  %v2210_v21 = vld [vmem:[#allocation2 + $0x464] ss:$8 sps:$4 sm:$0xff]  }
  0x5c   :  { %1354 = vmatpush1.bf16.msra.mxu0 %v2124_v22  ;;  %v2213_v22 = vld [vmem:[#allocation2 + $0x564] ss:$8 sps:$4 sm:$0xff]  }
  0x5d   :  { %1395 = vmatpush1.bf16.msra.mxu1 %v2127_v23  ;;  %1355 = vmatprep.subr.bf16.mxu0 %v2132_v24  ;;  %v283_v23 = vld [vmem:[%s2516_s0 + $0x48] sm:$0xff] }
  0x5e   :  { %1396 = vmatprep.subr.bf16.mxu1 %v2135_v25  ;;  %v2208_v24 = vld [vmem:[#allocation2 + $0x460] ss:$8 sps:$4 sm:$0xff]  }
  0x5f   :  { %v2211_v25 = vld [vmem:[#allocation2 + $0x560] ss:$8 sps:$4 sm:$0xff]  }
  0x60   :  { %1356 = vmatpush1.bf16.msra.mxu0 %v2130_v26  ;;  %v297_v26 = vpack.c.bf16 %v285_v18, %v285_v18  ;;  %v284_v18 = vld [vmem:[%s2516_s0 + $0x50] sm:$0xff] }
  0x61   :  { %1397 = vmatpush1.bf16.msra.mxu1 %v2133_v27  ;;  %1357 = vmatprep.subr.bf16.mxu0 %v2138_v28  ;;  %v295_v27 = vpack.c.bf16 %v283_v23, %v283_v23  ;;  %v2216_v28 = vld [vmem:[#allocation2 + $0x454] ss:$8 sps:$4 sm:$0xff]  }
  0x62   :  { %1398 = vmatprep.subr.bf16.mxu1 %v2141_v29  ;;  %v2219_v29 = vld [vmem:[#allocation2 + $0x554] ss:$8 sps:$4 sm:$0xff]  }
  0x64   :  { %1358 = vmatpush1.bf16.msra.mxu0 %v2136_v30  ;;  %v2214_v30 = vld [vmem:[#allocation2 + $0x450] ss:$8 sps:$4 sm:$0xff]  }
  0x65   :  { %1399 = vmatpush1.bf16.msra.mxu1 %v2139_v31  ;;  %1359 = vmatprep.subr.bf16.mxu0 %v2144_v32  ;;  %v2217_v31 = vld [vmem:[#allocation2 + $0x550] ss:$8 sps:$4 sm:$0xff]   ;;  %v2222_v32 = vld [vmem:[#allocation2 + $0x444] ss:$8 sps:$4 sm:$0xff]  }
  0x66   :  { %1400 = vmatprep.subr.bf16.mxu1 %v2147_v33  ;;  %v2225_v33 = vld [vmem:[#allocation2 + $0x544] ss:$8 sps:$4 sm:$0xff]  }
  0x68   :  { %1360 = vmatpush1.bf16.msra.mxu0 %v2142_v35  ;;  %v2223_v35 = vld [vmem:[#allocation2 + $0x540] ss:$8 sps:$4 sm:$0xff]  }
  0x69   :  { %1401 = vmatpush1.bf16.msra.mxu1 %v2145_v38  ;;  %1361 = vmatprep.subr.bf16.mxu0 %v2150_v39  ;;  %v2226_v38 = vld [vmem:[#allocation2 + $0x430] ss:$8 sps:$4 sm:$0xff]  }
  0x6a   :  { %1402 = vmatprep.subr.bf16.mxu1 %v2153_v41  ;;  %v2229_v39 = vld [vmem:[#allocation2 + $0x530] ss:$8 sps:$4 sm:$0xff]   ;;  %v2237_v41 = vld [vmem:[#allocation2 + $0x524] ss:$8 sps:$4 sm:$0xff]  }
  0x6c   :  { %1362 = vmatpush1.bf16.msra.mxu0 %v2148_v42  ;;  %v2232_v42 = vld [vmem:[#allocation2 + $0x420] ss:$8 sps:$4 sm:$0xff]  }
  0x6d   :  { %1403 = vmatpush1.bf16.msra.mxu1 %v2151_v43  ;;  %1363 = vmatprep.subr.bf16.mxu0 %v2156_v44  ;;  %v2235_v43 = vld [vmem:[#allocation2 + $0x520] ss:$8 sps:$4 sm:$0xff]   ;;  %v2240_v44 = vld [vmem:[#allocation2 + $0x414] ss:$8 sps:$4 sm:$0xff]  }
  0x6e   :  { %1404 = vmatprep.subr.bf16.mxu1 %v2159_v45  ;;  %v2243_v45 = vld [vmem:[#allocation2 + $0x514] ss:$8 sps:$4 sm:$0xff]  }
  0x70   :  { %1364 = vmatpush2.bf16.msra.mxu0 %v2154_v46  ;;  %v2238_v46 = vld [vmem:[#allocation2 + $0x410] ss:$8 sps:$4 sm:$0xff]  }
  0x71   :  { %1405 = vmatpush2.bf16.msra.mxu1 %v2157_v47  ;;  %1365 = vmatprep.subr.bf16.mxu0 %v2162_v48  ;;  %v2241_v47 = vld [vmem:[#allocation2 + $0x510] ss:$8 sps:$4 sm:$0xff]   ;;  %v2246_v48 = vld [vmem:[#allocation2 + $0x404] ss:$8 sps:$4 sm:$0xff]  }
  0x72   :  { %1406 = vmatprep.subr.bf16.mxu1 %v2165_v49  ;;  %v2249_v49 = vld [vmem:[#allocation2 + $0x504] ss:$8 sps:$4 sm:$0xff]  }
  0x74   :  { %1366 = vmatpush2.bf16.msra.mxu0 %v2160_v50  ;;  %v230_v50 = vld [vmem:[#allocation2 + $0x5e0] sm:$0xff] }
  0x75   :  { %1407 = vmatpush2.bf16.msra.mxu1 %v2163_v51  ;;  %1367 = vmatprep.subr.bf16.mxu0 %v2168_v52  ;;  %v2244_v51 = vld [vmem:[#allocation2 + $0x400] ss:$8 sps:$4 sm:$0xff]  }
  0x76   :  { %1408 = vmatprep.subr.bf16.mxu1 %v2171_v53  ;;  %v2247_v52 = vld [vmem:[#allocation2 + $0x500] ss:$8 sps:$4 sm:$0xff]   ;;  %v2252_v53 = vld [vmem:[#allocation2 + $0x4f4] ss:$8 sps:$4 sm:$0xff]  }
  0x78   :  { %1368 = vmatpush2.bf16.msra.mxu0 %v2166_v54  ;;  %v1939_v54 = vcombine.high %v230_v50, %v230_v50 }
  0x79   :  { %1409 = vmatpush2.bf16.msra.mxu1 %v2169_v55  ;;  %1369 = vmatprep.subr.bf16.mxu0 %v2174_v56  ;;  %v1938_v55 = vcombine.low %v230_v50, %v230_v50  ;;  %v2250_v56 = vld [vmem:[#allocation2 + $0x4f0] ss:$8 sps:$4 sm:$0xff]  }
  0x7a   :  { %1410 = vmatprep.subr.bf16.mxu1 %v2177_v57 }
  0x7b   :  { %v1260_v57 = vsel %vm1258_vm1, %v1938_v55, 0 }
  0x7c   :  { %1370 = vmatpush2.bf16.msra.mxu0 %v2172_v58  ;;  %v2257_v58 = vld [vmem:[#allocation2 + $0x4e4] ss:$8 sps:$4 sm:$0xff]  }
  0x7d   :  { %1411 = vmatpush2.bf16.msra.mxu1 %v2175_v59  ;;  %1371 = vmatprep.subr.bf16.mxu0 %v2180_v60  ;;  %v2260_v59 = vld [vmem:[#allocation2 + $0x5d4] ss:$8 sps:$4 sm:$0xff]   ;;  %v2255_v60 = vld [vmem:[#allocation2 + $0x4e0] ss:$8 sps:$4 sm:$0xff]  }
  0x7e   :  { %1412 = vmatprep.subr.bf16.mxu1 %v2183_v61  ;;  %v2258_v61 = vld [vmem:[#allocation2 + $0x5d0] ss:$8 sps:$4 sm:$0xff]  }
  0x80   :  { %1372 = vmatpush2.bf16.msra.mxu0 %v2178_v62  ;;  %v2263_v62 = vld [vmem:[#allocation2 + $0x4d4] ss:$8 sps:$4 sm:$0xff]  }
  0x81   :  { %1413 = vmatpush2.bf16.msra.mxu1 %v2181_v63  ;;  %1373 = vmatprep.subr.bf16.mxu0 %v2186_v0  ;;  %v2266_v63 = vld [vmem:[#allocation2 + $0x5c4] ss:$8 sps:$4 sm:$0xff]   ;;  %v2261_v0 = vld [vmem:[#allocation2 + $0x4d0] ss:$8 sps:$4 sm:$0xff]  }
  0x82   :  { %1414 = vmatprep.subr.bf16.mxu1 %v2189_v1  ;;  %v2264_v1 = vld [vmem:[#allocation2 + $0x5c0] ss:$8 sps:$4 sm:$0xff]  }
  0x84   :  { %1374 = vmatpush2.bf16.msra.mxu0 %v2184_v2  ;;  %v2269_v2 = vld [vmem:[#allocation2 + $0x4c4] ss:$8 sps:$4 sm:$0xff]  }
  0x85   :  { %1415 = vmatpush2.bf16.msra.mxu1 %v2187_v3  ;;  %1375 = vmatprep.subr.bf16.mxu0 %v2192_v4  ;;  %v2272_v3 = vld [vmem:[#allocation2 + $0x5b4] ss:$8 sps:$4 sm:$0xff]   ;;  %v2267_v4 = vld [vmem:[#allocation2 + $0x4c0] ss:$8 sps:$4 sm:$0xff]  }
  0x86   :  { %1416 = vmatprep.subr.bf16.mxu1 %v2195_v5  ;;  %v2270_v5 = vld [vmem:[#allocation2 + $0x5b0] ss:$8 sps:$4 sm:$0xff]  }
  0x88   :  { %1376 = vmatpush2.bf16.msra.mxu0 %v2190_v6  ;;  %v2275_v6 = vld [vmem:[#allocation2 + $0x4b4] ss:$8 sps:$4 sm:$0xff]  }
  0x89   :  { %1417 = vmatpush2.bf16.msra.mxu1 %v2193_v7  ;;  %1377 = vmatprep.subr.bf16.mxu0 %v2198_v8  ;;  %v2278_v7 = vld [vmem:[#allocation2 + $0x5a4] ss:$8 sps:$4 sm:$0xff]   ;;  %v2273_v8 = vld [vmem:[#allocation2 + $0x4b0] ss:$8 sps:$4 sm:$0xff]  }
  0x8a   :  { %1418 = vmatprep.subr.bf16.mxu1 %v2201_v9  ;;  %v2276_v9 = vld [vmem:[#allocation2 + $0x5a0] ss:$8 sps:$4 sm:$0xff]  }
  0x8c   :  { %1378 = vmatpush2.bf16.msra.mxu0 %v2196_v10  ;;  %v2281_v10 = vld [vmem:[#allocation2 + $0x4a4] ss:$8 sps:$4 sm:$0xff]  }
  0x8d   :  { %1419 = vmatpush2.bf16.msra.mxu1 %v2199_v11  ;;  %1429 = vmatprep.subr.bf16.mxu0 %v2204_v14  ;;  %v2284_v11 = vld [vmem:[#allocation2 + $0x594] ss:$8 sps:$4 sm:$0xff]  }
  0x8e   :  { %1470 = vmatprep.subr.bf16.mxu1 %v2207_v15  ;;  %v2287_v14 = vld [vmem:[#allocation2 + $0x494] ss:$8 sps:$4 sm:$0xff]   ;;  %v2290_v15 = vld [vmem:[#allocation2 + $0x584] ss:$8 sps:$4 sm:$0xff]  }
  0x8f   :  { %1380 = vmatmul.mubr.bf16.vlgmr.msra.gmra.mxu0 %v290_v16  ;;  %v2285_v16 = vld [vmem:[#allocation2 + $0x490] ss:$8 sps:$4 sm:$0xff]  }
  0x90   :  { %1421 = vmatmul.mubr.bf16.vlgmr.msra.gmra.mxu1 %v292_v17  ;;  %1430 = vmatpush1.bf16.msra.mxu0 %v2202_v19  ;;  %v2288_v17 = vld [vmem:[#allocation2 + $0x580] ss:$8 sps:$4 sm:$0xff]   ;;  %v2293_v19 = vld [vmem:[#allocation2 + $0x484] ss:$8 sps:$4 sm:$0xff]  }
  0x91   :  { %1471 = vmatpush1.bf16.msra.mxu1 %v2205_v20  ;;  %1431 = vmatprep.subr.bf16.mxu0 %v2210_v21  ;;  %v296_v20 = vpack.c.bf16 %v284_v18, %v284_v18  ;;  %v2291_v21 = vld [vmem:[#allocation2 + $0x480] ss:$8 sps:$4 sm:$0xff]  }
  0x92   :  { %1472 = vmatprep.subr.bf16.mxu1 %v2213_v22  ;;  %1941 = vmatprep.mubr.msk.bf16.mxu1 %vm1254_vm0, %v297_v26  ;;  %v282_v22 = vld [vmem:[%s2516_s0 + $0x40] sm:$0xff]  ;;  %v2296_v26 = vld [vmem:[%s2519_s3 + $0x70] sm:$0xff]  }
  0x93   :  { %1461 = vmatprep.mubr.bf16.mxu0 %v295_v27  ;;  %v294_v23 = vpack.c.bf16 %v282_v22, %v282_v22  ;;  %v2297_v27 = vld [vmem:[%s2519_s3 + $0x30] sm:$0xff]  }
  0x94   :  { %1432 = vmatpush1.bf16.msra.mxu0 %v2208_v24  ;;  %v2294_v24 = vld [vmem:[%s2519_s3 + $0x78] sm:$0xff]  }
  0x95   :  { %1473 = vmatpush1.bf16.msra.mxu1 %v2211_v25  ;;  %1433 = vmatprep.subr.bf16.mxu0 %v2216_v28  ;;  %v2295_v25 = vld [vmem:[%s2519_s3 + $0x38] sm:$0xff]   ;;  %v2298_v28 = vld [vmem:[%s2519_s3 + $0x68] sm:$0xff]  }
  0x96   :  { %1474 = vmatprep.subr.bf16.mxu1 %v2219_v29  ;;  %v2299_v29 = vld [vmem:[%s2519_s3 + $0x28] sm:$0xff]  }
  0x98   :  { %1434 = vmatpush1.bf16.msra.mxu0 %v2214_v30  ;;  %v2300_v30 = vld [vmem:[%s2519_s3 + $0x60] sm:$0xff]  }
  0x99   :  { %1475 = vmatpush1.bf16.msra.mxu1 %v2217_v31  ;;  %1435 = vmatprep.subr.bf16.mxu0 %v2222_v32  ;;  %v2301_v31 = vld [vmem:[%s2519_s3 + $0x20] sm:$0xff]   ;;  %v299_v32 = vlaneseq }
  0x9a   :  { %1476 = vmatprep.subr.bf16.mxu1 %v2225_v33 }
  0x9b   :  { %v300_v33 = vshrl.u32 %v299_v32, 7 }
  0x9c   :  { %1436 = vmatpush1.bf16.msra.mxu0 %v2220_v34 }
  0x9d   :  { %1477 = vmatpush1.bf16.msra.mxu1 %v2223_v35  ;;  %1437 = vmatprep.subr.bf16.mxu0 %v2228_v36  ;;  %v301_v34 = vsub.s32 0, %v300_v33  ;;  %v271_v35 = vld [vmem:[%s2518_s2] sm:$0x3]  ;;  %v2302_v36 = vld [vmem:[%s2519_s3 + $0x58] sm:$0xff]  }
  0x9e   :  { %1478 = vmatprep.subr.bf16.mxu1 %v2231_v37  ;;  %v305_v37 = vsub.s32 1, %v300_v33 }
  0xa0   :  { %1438 = vmatpush1.bf16.msra.mxu0 %v2226_v38  ;;  %v2303_v38 = vld [vmem:[%s2519_s3 + $0x18] sm:$0xff]  }
  0xa1   :  { %1479 = vmatpush1.bf16.msra.mxu1 %v2229_v39  ;;  %1439 = vmatprep.subr.bf16.mxu0 %v2234_v40  ;;  %v302_v39 = vrot.slane %v271_v35, %v301_v34  ;;  %v2304_v40 = vld [vmem:[%s2519_s3 + $0x50] sm:$0xff]  }
  0xa2   :  { %1480 = vmatprep.subr.bf16.mxu1 %v2237_v41  ;;  %v306_v41 = vrot.slane %v271_v35, %v305_v37  ;;  %v1959_v37 = vld [vmem:[%s2522_s6] ss:$0 sm:$0xff] }
  0xa4   :  { %1440 = vmatpush1.bf16.msra.mxu0 %v2232_v42  ;;  %v2305_v42 = vld [vmem:[%s2519_s3 + $0x10] sm:$0xff]  }
  0xa5   :  { %1481 = vmatpush1.bf16.msra.mxu1 %v2235_v43  ;;  %1441 = vmatprep.subr.bf16.mxu0 %v2240_v44 }
  0xa6   :  { %1482 = vmatprep.subr.bf16.mxu1 %v2243_v45 }
  0xa8   :  { %1442 = vmatpush1.bf16.msra.mxu0 %v2238_v46 }
  0xa9   :  { %1483 = vmatpush1.bf16.msra.mxu1 %v2241_v47  ;;  %1443 = vmatprep.subr.bf16.mxu0 %v2246_v48  ;;  %v2306_v48 = vld [vmem:[%s2519_s3 + $0x48] sm:$0xff]  }
  0xaa   :  { %1484 = vmatprep.subr.bf16.mxu1 %v2249_v49 }
  0xac   :  { %1444 = vmatpush1.bf16.msra.mxu0 %v2244_v51  ;;  %v2307_v51 = vld [vmem:[%s2519_s3 + $0x8] sm:$0xff]  }
  0xad   :  { %1485 = vmatpush1.bf16.msra.mxu1 %v2247_v52  ;;  %1445 = vmatprep.subr.bf16.mxu0 %v2252_v53 }
  0xae   :  { %1940 = vmatprep.subr.msk.bf16.mxu1 %vm1258_vm1, %v1939_v54 }
  0xb0   :  { %1446 = vmatpush2.bf16.msra.mxu0 %v2250_v56 }
  0xb1   :  { %1489 = vmatpush2.bf16.msra.mxu1 %v1260_v57  ;;  %1447 = vmatprep.subr.bf16.mxu0 %v2257_v58  ;;  %v2308_v57 = vld [vmem:[%s2519_s3 + $0x40] sm:$0xff]  }
  0xb2   :  { %1490 = vmatprep.subr.bf16.mxu1 %v2260_v59  ;;  %v2309_v58 = vld [vmem:[%s2519_s3] sm:$0xff]   ;;  %v2310_v59 = vld [vmem:[%s2521_s5 + $0x18] sm:$0xff]  }
  0xb4   :  { %1448 = vmatpush2.bf16.msra.mxu0 %v2255_v60  ;;  %v2361_v60 = vmov 0.0  }
  0xb5   :  { %1491 = vmatpush2.bf16.msra.mxu1 %v2258_v61  ;;  %1449 = vmatprep.subr.bf16.mxu0 %v2263_v62 }
  0xb6   :  { %1492 = vmatprep.subr.bf16.mxu1 %v2266_v63 }
  0xb8   :  { %1450 = vmatpush2.bf16.msra.mxu0 %v2261_v0 }
  0xb9   :  { %1493 = vmatpush2.bf16.msra.mxu1 %v2264_v1  ;;  %1451 = vmatprep.subr.bf16.mxu0 %v2269_v2 }
  0xba   :  { %1494 = vmatprep.subr.bf16.mxu1 %v2272_v3 }
  0xbc   :  { %1452 = vmatpush2.bf16.msra.mxu0 %v2267_v4 }
  0xbd   :  { %1495 = vmatpush2.bf16.msra.mxu1 %v2270_v5  ;;  %1453 = vmatprep.subr.bf16.mxu0 %v2275_v6 }
  0xbe   :  { %1496 = vmatprep.subr.bf16.mxu1 %v2278_v7 }
  0xc0   :  { %1454 = vmatpush2.bf16.msra.mxu0 %v2273_v8 }
  0xc1   :  { %1497 = vmatpush2.bf16.msra.mxu1 %v2276_v9  ;;  %1455 = vmatprep.subr.bf16.mxu0 %v2281_v10 }
  0xc2   :  { %1498 = vmatprep.subr.bf16.mxu1 %v2284_v11 }
  0xc4   :  { %1456 = vmatpush2.bf16.msra.mxu0 %v2279_v12 }
  0xc5   :  { %1499 = vmatpush2.bf16.msra.mxu1 %v2282_v13  ;;  %1457 = vmatprep.subr.bf16.mxu0 %v2287_v14 }
  0xc6   :  { %1500 = vmatprep.subr.bf16.mxu1 %v2290_v15 }
  0xc8   :  { %1458 = vmatpush2.bf16.msra.mxu0 %v2285_v16 }
  0xc9   :  { %1501 = vmatpush2.bf16.msra.mxu1 %v2288_v17  ;;  %1459 = vmatprep.subr.bf16.mxu0 %v2293_v19 }
  0xca   :  { %1965 = vmatprep.subr.bf16.mxu1 %v2294_v24 }
  0xcc   :  { %1503 = vmatmul.mubr.bf16.vlgmr.msra.gmra.mxu1 %v296_v20  ;;  %1460 = vmatpush2.bf16.msra.mxu0 %v2291_v21 }
  0xcd   :  { %1966 = vmatpush3.bf16.msra.mxu1 %v2295_v25  ;;  %1992 = vmatprep.subr.bf16.mxu0 %v2361_v60  ;;  %v2311_v25 = vld [vmem:[%s2521_s5 + $0x10] sm:$0xff]  }
  0xce   :  { %1967 = vmatprep.subr.bf16.mxu1 %v2296_v26  ;;  %v2312_v26 = vld [vmem:[%s2521_s5 + $0x8] sm:$0xff]  }
  0xcf   :  { %1462 = vmatmul.mubr.bf16.vlgmr.msra.gmra.mxu0 %v294_v23 }
  0xd0   :  { %1993 = vmatpush3.bf16.msra.mxu0 %v2310_v59  ;;  %2000 = vmatprep.mubr.msk.bf16.mxu0 %vm2362_vm2, %v2361_v60 }
  0xd1   :  { %1968 = vmatpush3.bf16.msra.mxu1 %v2297_v27  ;;  %1994 = vmatprep.subr.bf16.mxu0 %v2361_v60  ;;  %v2313_v27 = vld [vmem:[%s2521_s5] sm:$0xff]   ;;  %s2363_s5 = smov [#allocation5]  }
  0xd2   :  { %1969 = vmatprep.subr.bf16.mxu1 %v2298_v28  ;;  %s1741_s25 = sshll.u32 %s2363_s5, 4  ;;  %s1742_s25 = int_to_ptr.vmem [resolvable:$true] %s1741_s25 }
  0xd3   :  { %p2339_p6 = scmp.lt.s32.totalorder %s1742_s25, %s1742_s25 }
  0xd4   :  { %1995 = vmatpush3.bf16.msra.mxu0 %v2311_v25 }
  0xd5   :  { %1970 = vmatpush3.bf16.msra.mxu1 %v2299_v29  ;;  %1996 = vmatprep.subr.bf16.mxu0 %v2361_v60  ;;  %v1942_v29 = vld [vmem:[%s2520_s4] ss:$0 sm:$0xff]  ;;  %s2334_s4 = scalar_lea.vmem %s1742_s25, 64 }
  0xd6   :  { %1971 = vmatprep.subr.bf16.mxu1 %v2300_v30  ;;  %p2335_p5 = scmp.ne.s32.totalorder %s1742_s25, %s2334_s4  ;;  %p2340_p7 = scmp.lt.s32.totalorder %s2334_s4, %s2334_s4 }
  0xd8   :  { %1997 = vmatpush3.bf16.msra.mxu0 %v2312_v26  ;;  %p2341_p8 = por %p2340_p7, %p2339_p6 }
  0xd9   :  { %1972 = vmatpush3.bf16.msra.mxu1 %v2301_v31  ;;  %1998 = vmatprep.subr.bf16.mxu0 %v2361_v60 }
  0xda   :  { %1973 = vmatprep.subr.bf16.mxu1 %v2302_v36  ;;  %p2342_p9 = pnand %p2341_p8, %p2335_p5 }
  0xdc   :  { %1999 = vmatpush3.bf16.msra.mxu0 %v2313_v27 }
  0xdd   :  { %1974 = vmatpush3.bf16.msra.mxu1 %v2303_v38 }
  0xde   :  { %1975 = vmatprep.subr.bf16.mxu1 %v2304_v40 }
  0xe1   :  { %1976 = vmatpush3.bf16.msra.mxu1 %v2305_v42 }
  0xe2   :  { %1977 = vmatprep.subr.bf16.mxu1 %v2306_v48 }
  0xe5   :  { %1978 = vmatpush3.bf16.msra.mxu1 %v2307_v51 }
  0xe6   :  { %1979 = vmatprep.subr.bf16.mxu1 %v2308_v57 }
  0xe9   :  { %1980 = vmatpush3.bf16.msra.mxu1 %v2309_v58 }
 0x10f   :  { %v1299_v43 = vpop.f32.mrf.mxu0 }
 0x110   :  { %v1340_v44 = vpop.f32.mrf.mxu1  ;;  %v1300_v45 = vadd.f32 %v1299_v43, %v302_v39 }
 0x111   :  { %v1301_v46 = vpop.f32.mrf.mxu0 }
 0x112   :  { %v1342_v47 = vpop.f32.mrf.mxu1  ;;  %v1341_v49 = vadd.f32 %v1340_v44, %v1300_v45  ;;  %v1302_v50 = vadd.f32 %v1301_v46, %v306_v41 }
 0x113   :  { %v1303_v52 = vpop.f32.mrf.mxu0 }
 0x114   :  { %v1344_v53 = vpop.f32.mrf.mxu1  ;;  %v1343_v54 = vadd.f32 %v1342_v47, %v1302_v50 }
 0x115   :  { %v1304_v55 = vpop.f32.mrf.mxu0 }
 0x116   :  { %v1345_v56 = vpop.f32.mrf.mxu1 }
 0x14f   :  { %v1381_v61 = vpop.f32.mrf.mxu0 }
 0x150   :  { %v1422_v62 = vpop.f32.mrf.mxu1  ;;  %v1382_v63 = vadd.f32 %v1381_v61, %v1341_v49 }
 0x151   :  { %v1383_v0 = vpop.f32.mrf.mxu0 }
 0x152   :  { %v1424_v1 = vpop.f32.mrf.mxu1  ;;  %v1423_v2 = vadd.f32 %v1422_v62, %v1382_v63  ;;  %v1384_v8 = vadd.f32 %v1383_v0, %v1343_v54 }
 0x153   :  { %v1385_v3 = vpop.f32.mrf.mxu0 }
 0x154   :  { %v1426_v4 = vpop.f32.mrf.mxu1  ;;  %v1425_v12 = vadd.f32 %v1424_v1, %v1384_v8 }
 0x155   :  { %v1386_v5 = vpop.f32.mrf.mxu0 }
 0x156   :  { %v1427_v6 = vpop.f32.mrf.mxu1 }
 0x18c   :  { %v1504_v7 = vpop.f32.mrf.mxu1 }
 0x18e   :  { %v1506_v9 = vpop.f32.mrf.mxu1 }
 0x18f   :  { %v1463_v10 = vpop.f32.mrf.mxu0 }
 0x190   :  { %v1508_v11 = vpop.f32.mrf.mxu1  ;;  %v1464_v13 = vadd.f32 %v1463_v10, %v1423_v2 }
 0x191   :  { %v1465_v14 = vpop.f32.mrf.mxu0 }
 0x192   :  { %v1509_v15 = vpop.f32.mrf.mxu1  ;;  %v1505_v16 = vadd.f32 %v1504_v7, %v1464_v13  ;;  %v1466_v17 = vadd.f32 %v1465_v14, %v1425_v12 }
 0x193   :  { %v1467_v18 = vpop.f32.mrf.mxu0 }
 0x194   :  { %v1507_v19 = vadd.f32 %v1506_v9, %v1466_v17  ;;  %v1511_v20 = vmax.f32 %v1505_v16, 0.0 }
 0x195   :  { %v1468_v21 = vpop.f32.mrf.mxu0 }
 0x196   :  { %v1512_v22 = vmax.f32 %v1507_v19, 0.0  ;;  %v1513_v24 = vpack.c.bf16 %v1511_v20, %v1511_v20 }
 0x198   :  { %v1514_v23 = vpack.c.bf16 %v1512_v22, %v1512_v22 }
 0x19a   :  { %1649 = vmatprep.mubr.bf16.mxu1 %v1514_v23 }
 0x19b   :  { %1650 = vmatmul.mubr.bf16.vlgmr.msra.gmra.mxu1 %v1513_v24 }
 0x25b   :  { %v1981_v28 = vpop.f32.mrf.mxu1 }
 0x25d   :  { %v1982_v30 = vpop.f32.mrf.mxu1 }
 0x25e   :  { %v1983_v31 = vadd.f32 %v1982_v30, %v1981_v28 }
 0x25f   :  { %v1984_v32 = vpop.f32.mrf.mxu1 }
 0x260   :  { %v1652_v33 = vadd.f32 %v1983_v31, %v1942_v29 }
 0x261   :  { %v1985_v34 = vpop.f32.mrf.mxu1 }
 0x262   :  { %v1657_v35 = vmax.f32 %v1652_v33, 0.0 }
 0x264   :  { %v1658_v36 = vpack.c.bf16 %v1657_v35, %v1657_v35 }
 0x266   :  { %2001 = vmatmul.mubr.msk.bf16.vlgmr.msra.gmra.mxu0 %vm1689_vm3, %v1658_v36 }
 0x326   :  { %v1727_v38 = vpop.f32.mrf.mxu0 }
 0x327   :  { %v1728_v39 = vadd.f32 %v1959_v37, %v1727_v38 }
 0x328   :  { %v2002_v40 = vpop.f32.mrf.mxu0 }
 0x329   :  { %v1733_v41 = vpack.c.bf16 %v1728_v39, %v1728_v39 }
 0x32a   :  { %v1730_v42 = vpop.f32.mrf.mxu0 }
 0x32b   :  { %1734 = vst [vmem:[#allocation5] sm:$0xf] %v1733_v41 }
 0x32c   :  { %v2003_v43 = vpop.f32.mrf.mxu0 }
 0x32d   :  { %2345 = shalt.err (!%p2342_p9)
}
 0x32e   :  { %1744 = dma.vmem_to_hbm [thread:$0]  %s1742_s25, 64, %s2523_s7, [#allocation4]  }
 0x32f   :  { %2356 = dma.done.wait [#allocation4], 64  }
 0x330   :  { %2357 = vsyncadd [#allocation4], 4294967232 }
 0x331   :  { %1748 = vsyncpa [#allocation3], 1 }
 0x332   :  { %1749 = vsyncpa [#allocation4], 1 }

</bundles_post_ra>
